<compile_context>
chip_gen: v5e
topology: v5e:2x2
jax: 0.10.0
libtpu: 0.0.40
codegen_flags: <defaults>
</compile_context>

<pallas_src>
import functools

import jax
import jax.numpy as jnp
from jax import lax
from jax.experimental import pallas as pl
from jax.experimental.pallas import tpu as pltpu

LANES = 128
TILE_R_MAX = 8192                      # 8192 x 128 x 4B = 4 MiB per f32 input block
VMEM_LIMIT_BYTES = 40 * 1024 * 1024    # covers 2 inputs x 2 buffers x 4 MiB + temps,
                                       # with headroom under v7x's 64 MiB physical VMEM


def _wmse_kernel(p_ref, t_ref, o_ref, acc_ref, *,
                 tile_r, rows_total, blocks_per_split, full_blocks, has_partial):
    j = pl.program_id(1)

    # Zero this split's single-vreg accumulator on its first step.
    @pl.when(j == 0)
    def _():
        acc_ref[...] = jnp.zeros_like(acc_ref)

    # truths.float() semantics: upcast both operands to f32 in-kernel (VPU cast;
    # HBM reads stay at the source dtype width, halving traffic for bf16).
    p = p_ref[...].astype(jnp.float32)
    t = t_ref[...].astype(jnp.float32)
    d = p - t

    def accumulate(dd):
        d2 = dd * dd
        # (tile_r, 128) -> (tile_r//8, 8, 128): every (8,128) slab is exactly one
        # vreg, so the axis-0 sum is pure VALU vreg-to-vreg adds (no XLU) and the
        # running accumulator stays a single vreg.
        acc_ref[...] += d2.reshape(tile_r // 8, 8, LANES).sum(axis=0)

    if has_partial:
        blk = pl.program_id(0) * blocks_per_split + j

        if full_blocks > 0:
            # Full blocks: unmasked, strictly DMA-bound path.
            @pl.when(blk < full_blocks)
            def _():
                accumulate(d)

        # Only the last real block (partial rows) and any phantom block of the
        # short split pay for the mask. rows_remaining <= 0 for phantom blocks,
        # so they contribute exactly zero even though their (clamped) DMA
        # re-reads the last real block.
        @pl.when(blk >= full_blocks)
        def _():
            rows_remaining = rows_total - blk * tile_r
            row_ids = lax.broadcasted_iota(jnp.int32, (tile_r, LANES), 0)
            accumulate(jnp.where(row_ids < rows_remaining, d, 0.0))
    else:
        accumulate(d)

    # Lane-dense per-split partial, written once on the split's last step.
    @pl.when(j == pl.num_programs(1) - 1)
    def _():
        o_ref[...] = acc_ref[...].reshape(1, 8, LANES)


def weighted_mse_loss(preds, truths, *, tile_r_max=TILE_R_MAX):
    """Sum of squared errors between preds and truths (truths cast to f32)."""
    assert preds.shape == truths.shape, "preds/truths shape mismatch"
    assert tile_r_max % 8 == 0

    p_flat = jnp.ravel(preds)
    t_flat = jnp.ravel(truths)
    n = p_flat.shape[0]

    rem = n % LANES
    main = n - rem

    # The (<128-element) lane tail is summed with plain jnp instead of padding
    # both full tensors in HBM (jnp.pad doubled end-to-end HBM traffic).
    tail = 0.0
    if rem:
        tp = p_flat[main:].astype(jnp.float32)
        tt = t_flat[main:].astype(jnp.float32)
        tail = jnp.sum((tp - tt) ** 2)
        if main == 0:
            return jnp.asarray(tail, jnp.float32)
        p_flat = p_flat[:main]
        t_flat = t_flat[:main]

    rows = main // LANES
    p2 = p_flat.reshape(rows, LANES)
    t2 = t_flat.reshape(rows, LANES)

    # Keep the row tile a multiple of 8 so the in-kernel (tile_r//8, 8, 128)
    # reshape is always legal; a block slightly larger than the array is fine
    # (the OOB rows are masked).
    rows8 = ((rows + 7) // 8) * 8
    tile_r = min(rows8, tile_r_max)

    nblocks = pl.cdiv(rows, tile_r)
    full_blocks = rows // tile_r

    # Always split 2-ways when there is more than one block so both v7x
    # TensorCores stream (odd block counts get a clamped, fully-masked phantom
    # block on the short split). Harmless sequential split on v5e/v6e.
    nsplit = 2 if nblocks >= 2 else 1
    bpc = pl.cdiv(nblocks, nsplit)
    phantom = nsplit * bpc != nblocks
    has_partial = phantom or (rows % tile_r != 0)

    if phantom:
        def idx(c, j, _bpc=bpc, _last=nblocks - 1):
            return (jnp.minimum(c * _bpc + j, _last), 0)
    else:
        def idx(c, j, _bpc=bpc):
            return (c * _bpc + j, 0)

    kernel = functools.partial(
        _wmse_kernel,
        tile_r=tile_r,
        rows_total=rows,
        blocks_per_split=bpc,
        full_blocks=full_blocks,
        has_partial=has_partial,
    )

    out = pl.pallas_call(
        kernel,
        out_shape=jax.ShapeDtypeStruct((nsplit, 8, LANES), jnp.float32),
        grid_spec=pltpu.PrefetchScalarGridSpec(
            num_scalar_prefetch=0,
            grid=(nsplit, bpc),
            in_specs=[
                pl.BlockSpec((tile_r, LANES), idx),
                pl.BlockSpec((tile_r, LANES), idx),
            ],
            out_specs=pl.BlockSpec((1, 8, LANES), lambda c, j: (c, 0, 0)),
            scratch_shapes=[pltpu.VMEM((8, LANES), jnp.float32)],
        ),
        compiler_params=pltpu.CompilerParams(
            # TODO(synk): if xprof shows only one v7x TensorCore active, switch
            # the leading axis to pltpu.CORE_PARALLEL (or drive it via
            # pl.core_map) — plain "parallel" may not re-assign cores.
            dimension_semantics=("parallel", "arbitrary"),
            vmem_limit_bytes=VMEM_LIMIT_BYTES,
        ),
    )(p2, t2)

    # Sum the (at most 2) lane-dense per-split partials + the tiny tail.
    return jnp.sum(out) + tail


def _ref(preds, truths):
    p = preds.astype(jnp.float32)
    t = truths.astype(jnp.float32)
    return jnp.sum((p - t) ** 2)


if __name__ == "__main__":
    key = jax.random.PRNGKey(0)
    k1, k2, k3, k4, k5, k6 = jax.random.split(key, 6)

    # 1) Primary small NCHW case (f32): lane-aligned, single full-extent block.
    preds = jax.random.normal(k1, (2, 4, 16, 16), dtype=jnp.float32)
    truths = jax.random.normal(k2, (2, 4, 16, 16), dtype=jnp.float32)
    loss = jax.block_until_ready(weighted_mse_loss(preds, truths))
    ref = _ref(preds, truths)
    assert jnp.allclose(loss, ref, rtol=1e-5, atol=1e-5), (loss, ref)

    # 2) Mixed dtype (bf16 preds, f32 truths), size not a multiple of 128:
    #    exercises the in-kernel cast, the jnp tail path, and the row-mask on a
    #    block that is larger (16 rows) than the array (15 rows).
    preds_b = jax.random.normal(k3, (2, 3, 17, 19), dtype=jnp.bfloat16)
    truths_b = jax.random.normal(k4, (2, 3, 17, 19), dtype=jnp.float32)
    loss_b = jax.block_until_ready(weighted_mse_loss(preds_b, truths_b))
    ref_b = _ref(preds_b, truths_b)
    assert jnp.allclose(loss_b, ref_b, rtol=1e-4, atol=1e-4), (loss_b, ref_b)

    # 3) Larger f32 case, default tile: single 1600-row block, unmasked path.
    preds_c = jax.random.normal(k5, (2, 4, 160, 160), dtype=jnp.float32)
    truths_c = jax.random.normal(k6, (2, 4, 160, 160), dtype=jnp.float32)
    loss_c = jax.block_until_ready(weighted_mse_loss(preds_c, truths_c))
    ref_c = _ref(preds_c, truths_c)
    assert jnp.allclose(loss_c, ref_c, rtol=1e-4, atol=1e-4), (loss_c, ref_c)

    # 4) Same data, forced small tile (256 rows): 7 blocks -> 2-way split with a
    #    clamped phantom block and a partial (masked) last block.
    loss_d = jax.block_until_ready(
        weighted_mse_loss(preds_c, truths_c, tile_r_max=256))
    assert jnp.allclose(loss_d, ref_c, rtol=1e-4, atol=1e-4), (loss_d, ref_c)

    # 5) Same data, forced 512-row tile: even 2-way split (no phantom) with a
    #    partial last block.
    loss_e = jax.block_until_ready(
        weighted_mse_loss(preds_c, truths_c, tile_r_max=512))
    assert jnp.allclose(loss_e, ref_c, rtol=1e-4, atol=1e-4), (loss_e, ref_c)

    print("KERNEL_OK")
</pallas_src>

<mosaic_0001>
module attributes {stable_mosaic.version = 11 : i64} {
  func.func @_wmse_kernel(%arg0: i32, %arg1: i32, %arg2: memref<16x128xf32, #tpu.memory_space<vmem>>, %arg3: memref<16x128xf32, #tpu.memory_space<vmem>>, %arg4: memref<1x8x128xf32, #tpu.memory_space<vmem>>, %arg5: memref<8x128xf32, #tpu.memory_space<vmem>>) attributes {dimension_semantics = [#tpu.dimension_semantics<parallel>, #tpu.dimension_semantics<arbitrary>], iteration_bounds = array<i64: 1, 1>, scalar_prefetch = 0 : i64, scratch_operands = 1 : i64, tpu.core_type = #tpu.core_type<tc>, window_params = [{transform_indices = @transform_0, window_bounds = array<i64: 16, 128>}, {transform_indices = @transform_1, window_bounds = array<i64: 16, 128>}, {transform_indices = @transform_2, window_bounds = array<i64: 1, 8, 128>}]} {
    %c0_i32 = arith.constant 0 : i32
    %0 = arith.cmpi eq, %arg1, %c0_i32 : i32
    %1 = arith.extui %0 : i1 to i32
    %c0_i32_0 = arith.constant 0 : i32
    %2 = arith.cmpi ne, %1, %c0_i32_0 : i32
    scf.if %2 {
      %cst_10 = arith.constant 0.000000e+00 : f32
      %15 = vector.broadcast %cst_10 : f32 to vector<8x128xf32>
      %c0_11 = arith.constant 0 : index
      %c0_12 = arith.constant 0 : index
      %16 = vector.load %arg5[%c0_11, %c0_12] : memref<8x128xf32, #tpu.memory_space<vmem>>, vector<8x128xf32>
      tpu.vector_store %arg5[%c0_11, %c0_12], %15 {strides = array<i32>} : memref<8x128xf32, #tpu.memory_space<vmem>>, vector<8x128xf32>,
    } else {
    }
    %c0 = arith.constant 0 : index
    %c0_1 = arith.constant 0 : index
    %3 = vector.load %arg2[%c0, %c0_1] : memref<16x128xf32, #tpu.memory_space<vmem>>, vector<16x128xf32>
    %c0_2 = arith.constant 0 : index
    %c0_3 = arith.constant 0 : index
    %4 = vector.load %arg3[%c0_2, %c0_3] : memref<16x128xf32, #tpu.memory_space<vmem>>, vector<16x128xf32>
    %5 = arith.subf %3, %4 : vector<16x128xf32>
    %6 = arith.mulf %5, %5 : vector<16x128xf32>
    %c0_4 = arith.constant 0 : index
    %c0_5 = arith.constant 0 : index
    %7 = vector.load %arg5[%c0_4, %c0_5] : memref<8x128xf32, #tpu.memory_space<vmem>>, vector<8x128xf32>
    %8 = vector.shape_cast %6 : vector<16x128xf32> to vector<2x8x128xf32>
    %cst = arith.constant dense<0.000000e+00> : vector<8x128xf32>
    %9 = vector.multi_reduction <add>, %8, %cst [0] : vector<2x8x128xf32> to vector<8x128xf32>
    %10 = arith.addf %7, %9 : vector<8x128xf32>
    %c0_6 = arith.constant 0 : index
    %c0_7 = arith.constant 0 : index
    %11 = vector.load %arg5[%c0_6, %c0_7] : memref<8x128xf32, #tpu.memory_space<vmem>>, vector<8x128xf32>
    tpu.vector_store %arg5[%c0_6, %c0_7], %10 {strides = array<i32>} : memref<8x128xf32, #tpu.memory_space<vmem>>, vector<8x128xf32>,
    %c0_i32_8 = arith.constant 0 : i32
    %12 = arith.cmpi eq, %arg1, %c0_i32_8 : i32
    %13 = arith.extui %12 : i1 to i32
    %c0_i32_9 = arith.constant 0 : i32
    %14 = arith.cmpi ne, %13, %c0_i32_9 : i32
    scf.if %14 {
      %c0_10 = arith.constant 0 : index
      %c0_11 = arith.constant 0 : index
      %15 = vector.load %arg5[%c0_10, %c0_11] : memref<8x128xf32, #tpu.memory_space<vmem>>, vector<8x128xf32>
      %16 = vector.shape_cast %15 : vector<8x128xf32> to vector<1x8x128xf32>
      %c0_12 = arith.constant 0 : index
      %c0_13 = arith.constant 0 : index
      %c0_14 = arith.constant 0 : index
      %17 = vector.load %arg4[%c0_12, %c0_13, %c0_14] : memref<1x8x128xf32, #tpu.memory_space<vmem>>, vector<1x8x128xf32>
      tpu.vector_store %arg4[%c0_12, %c0_13, %c0_14], %16 {strides = array<i32>} : memref<1x8x128xf32, #tpu.memory_space<vmem>>, vector<1x8x128xf32>,
    } else {
    }
    return
  }
  func.func @transform_0(%arg0: i32, %arg1: i32) -> (i32, i32) {
    %c1_i32 = arith.constant 1 : i32
    %0 = arith.muli %arg0, %c1_i32 : i32
    %1 = arith.addi %0, %arg1 : i32
    %c0_i32 = arith.constant 0 : i32
    %c0_i32_0 = arith.constant 0 : i32
    return %1, %c0_i32 : i32, i32
  }
  func.func @transform_1(%arg0: i32, %arg1: i32) -> (i32, i32) {
    %c1_i32 = arith.constant 1 : i32
    %0 = arith.muli %arg0, %c1_i32 : i32
    %1 = arith.addi %0, %arg1 : i32
    %c0_i32 = arith.constant 0 : i32
    %c0_i32_0 = arith.constant 0 : i32
    return %1, %c0_i32 : i32, i32
  }
  func.func @transform_2(%arg0: i32, %arg1: i32) -> (i32, i32, i32) {
    %c0_i32 = arith.constant 0 : i32
    %c0_i32_0 = arith.constant 0 : i32
    %c0_i32_1 = arith.constant 0 : i32
    return %arg0, %c0_i32, %c0_i32_0 : i32, i32, i32
  }
}

</mosaic_0001>

<bundles_post_ra>
// kernel: tpu_custom_call.1
= control target key start
LH: loop header
LB: loop body
LE: loop exit
PB: predicated region body
PF: predicated region fallthrough
CT: control target
= control target key end

     0   :  { %7 = vsyncpa [#allocation4], 0  ;;  %s208_s0 = inlined_call_operand.hbm [shape: f32[16,128], index: 0, kind: input, shape index: {}]   ;;  %s209_s1 = inlined_call_operand.hbm [shape: f32[16,128], index: 1, kind: input, shape index: {}]   ;;  %s210_s2 = inlined_call_operand.hbm [shape: f32[1,8,128], index: 2, kind: output, shape index: {}]  }
   0x1   :  { %8 = vsyncpa [#allocation7], 0 }
   0x2   :  { %9 = vsyncpa [#allocation5], 0  ;;  %s18_s11 = sshll.u32 %s208_s0, 4  ;;  %s179_s12 = smov [#allocation3]   ;;  %s19_s11 = int_to_ptr.hbm [resolvable:$true] %s18_s11 }
   0x3   :  { %s20_s13 = sshll.u32 %s179_s12, 4  ;;  %s35_s16 = sshll.u32 %s209_s1, 4  ;;  %s21_s13 = int_to_ptr.vmem [resolvable:$true] %s20_s13  ;;  %s36_s16 = int_to_ptr.hbm [resolvable:$true] %s35_s16 }
   0x4   :  { %s180_s17 = smov 128   ;;  %s181_s18 = smov 8  }
   0x5   :  { %26 = dma.hbm_to_vmem [thread:$0]  %s19_s11, 256, %s21_s13, [#allocation4], %s180_s17, %s180_s17, %s181_s18  }
   0x6   :  { %s182_s19 = smov [#allocation6]  }
   0x7   :  { %s37_s20 = sshll.u32 %s182_s19, 4  ;;  %s38_s20 = int_to_ptr.vmem [resolvable:$true] %s37_s20 }
   0x8   :  { %43 = dma.hbm_to_vmem [thread:$0]  %s36_s16, 256, %s38_s20, [#allocation7], %s180_s17, %s180_s17, %s181_s18  }
   0x9   :  { %173 = dma.done.wait [#allocation4], 256  }
   0xa   :  { %174 = vsyncadd [#allocation4], 4294967040 }
   0xb   :  { %175 = dma.done.wait [#allocation7], 256  }
   0xc   :  { %176 = vsyncadd [#allocation7], 4294967040  ;;  %v61_v0 = vld [vmem:[#allocation3] sm:$0xff]  ;;  %v62_v1 = vld [vmem:[#allocation3 + $0x8] sm:$0xff]  ;;  %s183_s0 = smov [#allocation8]   ;;  %s85_s23 = sshll.u32 %s210_s2, 4  ;;  %s86_s23 = int_to_ptr.hbm [resolvable:$true] %s85_s23 }
   0xd   :  { %v63_v2 = vld [vmem:[#allocation6] sm:$0xff]  ;;  %v64_v3 = vld [vmem:[#allocation6 + $0x8] sm:$0xff]  ;;  %s83_s1 = sshll.u32 %s183_s0, 4  ;;  %s84_s1 = int_to_ptr.vmem [resolvable:$true] %s83_s1 }
   0xe   :  { %v65_v4 = vsub.f32 %v61_v0, %v63_v2  ;;  %v66_v5 = vsub.f32 %v62_v1, %v64_v3 }
  0x10   :  { %v67_v6 = vmul.f32 %v65_v4, %v65_v4  ;;  %v68_v7 = vmul.f32 %v66_v5, %v66_v5 }
  0x12   :  { %v70_v8 = vadd.f32 %v68_v7, %v67_v6 }
  0x14   :  { %77 = vst [vmem:[#allocation8] sm:$0xff] %v70_v8 }
  0x15   :  { %88 = dma.vmem_to_hbm [thread:$0]  %s84_s1, 128, %s86_s23, [#allocation5]  }
  0x16   :  { %177 = dma.done.wait [#allocation5], 128  }
  0x17   :  { %178 = vsyncadd [#allocation5], 4294967168 }
  0x18   :  { %93 = vsyncpa [#allocation4], 1 }
  0x19   :  { %94 = vsyncpa [#allocation7], 1 }
  0x1a   :  { %95 = vsyncpa [#allocation5], 1 }

</bundles_post_ra>
